<compile_context>
chip_gen: v5e
topology: v5e:2x2
jax: 0.10.0
libtpu: 0.0.40
codegen_flags: <defaults>
</compile_context>

<pallas_src>
import numpy as np
import jax
import jax.numpy as jnp
from jax.experimental import pallas as pl
from jax.experimental.pallas import tpu as pltpu


def _round_up(x, m):
    return ((x + m - 1) // m) * m


def _vmem_budget_bytes():
    """~75% of physical VMEM; conservative 64 MiB fallback (v7x per-TC size)."""
    cap = None
    try:
        cap = pltpu.get_tpu_info().vmem_capacity_bytes
    except Exception:
        cap = None
    if not cap:
        cap = 64 << 20
    return int(cap) * 3 // 4


def _moe_expert_kernel(ti_ref, x_ref, w1_ref, b1_ref, w2_ref, b2_ref, tw_ref,
                       o_ref, acc_ref):
    """Grid step = (sequence b, token tile s, selected-expert slot k, F tile f)."""
    b = pl.program_id(0)
    k = pl.program_id(2)
    f = pl.program_id(3)
    nk = pl.num_programs(2)
    nf = pl.num_programs(3)

    @pl.when(jnp.logical_and(k == 0, f == 0))
    def _():
        acc_ref[...] = jnp.zeros_like(acc_ref)

    rw = tw_ref[b, k]                     # routing weight (f32 scalar in SMEM)

    x = x_ref[0]                                                        # (ts, H)
    h = jnp.dot(x, w1_ref[0], preferred_element_type=jnp.float32) + b1_ref[0]
    # exact (erf-based) GELU, matching torch.nn.GELU() default
    h = 0.5 * h * (1.0 + jax.lax.erf(h * jnp.float32(0.7071067811865476)))
    # cast back to the weight dtype so bf16 models keep the fast MXU path
    h = h.astype(w2_ref.dtype)
    y = jnp.dot(h, w2_ref[0], preferred_element_type=jnp.float32)       # (ts, H)

    acc_ref[...] += rw * y

    @pl.when(f == 0)                     # weighted output bias once per expert
    def _():
        acc_ref[...] += rw * b2_ref[0]

    @pl.when(jnp.logical_and(k == nk - 1, f == nf - 1))
    def _():
        o_ref[0] = acc_ref[...].astype(o_ref.dtype)


def sequence_sparse_moe_block(x, gate_w, w1, b1, w2, b2, top_k,
                              ts=256, tf=512, vmem_limit_bytes=None):
    """x: (B, S, H).  gate_w: (E, H).  w1: (E, H, F), b1: (E, F),
    w2: (E, F, H), b2: (E, H).  Expert weights are pre-transposed so the kernel
    computes x @ w (equivalent to torch nn.Linear's x @ W.T)."""
    B, S, H = x.shape
    E, _, F = w1.shape
    dsize = x.dtype.itemsize

    # ---- sequence-level router (tiny B x E glue in plain JAX) ----
    # TODO(synk): router jitter noise is training-only (torch .uniform_), skipped.
    seq_repr = jnp.mean(x, axis=1)                                   # (B, H)
    logits = jnp.dot(seq_repr, gate_w.T)                             # (B, E)
    probs = jax.nn.softmax(logits.astype(jnp.float32), axis=-1)
    top_w, top_i = jax.lax.top_k(probs, top_k)                       # (B, top_k)
    top_w = top_w / jnp.sum(top_w, axis=-1, keepdims=True)
    # torch casts the routing weights back to the activation dtype before use
    top_w = top_w.astype(x.dtype).astype(jnp.float32)                # SMEM scalars
    top_i = top_i.astype(jnp.int32)                                  # scalar prefetch

    # ---- pad to MXU / lane friendly shapes (zero padding is exactly neutral) ----
    H_pad = _round_up(H, 128)
    ts = _round_up(min(ts, _round_up(S, 8)), 8)
    tf = _round_up(min(tf, _round_up(F, 128)), 128)

    # ---- fit the per-step working set inside the VMEM budget ----
    # double-buffered weight blocks dominate, so shrink tf first, then ts.
    budget = vmem_limit_bytes if vmem_limit_bytes is not None else _vmem_budget_bytes()

    def _estimate(ts_, tf_):
        wgt = 2 * 2 * H_pad * tf_ * dsize          # w1 + w2, double buffered
        act = (2 + 2) * ts_ * H_pad * dsize        # x + out, double buffered
        acc = ts_ * H_pad * 4                      # f32 accumulator scratch
        bias = 2 * (tf_ + H_pad) * dsize           # b1 + b2, double buffered
        return wgt + act + acc + bias

    while _estimate(ts, tf) > budget:
        w_bytes = 4 * H_pad * tf * dsize
        a_bytes = (4 * dsize + 4) * ts * H_pad
        if tf > 128 and (w_bytes >= a_bytes or ts <= 8):
            tf = max(128, (tf // 2) // 128 * 128)
        elif ts > 8:
            ts = max(8, _round_up(ts // 2, 8))
        else:
            break

    F_pad = _round_up(F, tf)
    S_pad = _round_up(S, ts)

    xp = jnp.pad(x, ((0, 0), (0, S_pad - S), (0, H_pad - H)))
    w1p = jnp.pad(w1, ((0, 0), (0, H_pad - H), (0, F_pad - F)))
    b1p = jnp.pad(b1, ((0, 0), (0, F_pad - F))).reshape(E, 1, F_pad)
    w2p = jnp.pad(w2, ((0, 0), (0, F_pad - F), (0, H_pad - H)))
    b2p = jnp.pad(b2, ((0, 0), (0, H_pad - H))).reshape(E, 1, H_pad)

    grid = (B, S_pad // ts, top_k, F_pad // tf)

    if vmem_limit_bytes is None:
        vmem_limit_bytes = budget     # raise the default scoped limit (still < physical)

    out = pl.pallas_call(
        _moe_expert_kernel,
        out_shape=jax.ShapeDtypeStruct((B, S_pad, H_pad), x.dtype),
        grid_spec=pltpu.PrefetchScalarGridSpec(
            num_scalar_prefetch=1,           # top_i -> SMEM, used in index_maps
            grid=grid,
            in_specs=[
                # x token tile of one sequence (block index constant over k,f ->
                # stays resident, no redundant DMA)
                pl.BlockSpec((1, ts, H_pad), lambda b, s, k, f, ti: (b, s, 0)),
                # w1[e][:, f-tile] for the k-th selected expert of sequence b
                pl.BlockSpec((1, H_pad, tf),
                             lambda b, s, k, f, ti: (ti[b, k], 0, f)),
                pl.BlockSpec((1, 1, tf),
                             lambda b, s, k, f, ti: (ti[b, k], 0, f)),
                # w2[e][f-tile, :]
                pl.BlockSpec((1, tf, H_pad),
                             lambda b, s, k, f, ti: (ti[b, k], f, 0)),
                pl.BlockSpec((1, 1, H_pad),
                             lambda b, s, k, f, ti: (ti[b, k], 0, 0)),
                # normalized routing weights (B, top_k) live whole in SMEM
                pl.BlockSpec(memory_space=pltpu.MemorySpace.SMEM),
            ],
            out_specs=pl.BlockSpec((1, ts, H_pad),
                                   lambda b, s, k, f, ti: (b, s, 0)),
            scratch_shapes=[pltpu.VMEM((ts, H_pad), jnp.float32)],
        ),
        compiler_params=pltpu.CompilerParams(
            dimension_semantics=("parallel", "parallel", "arbitrary", "arbitrary"),
            vmem_limit_bytes=vmem_limit_bytes,
        ),
    )(top_i, xp, w1p, b1p, w2p, b2p, top_w)

    return out[:, :S, :H]


def reference(x, gate_w, w1, b1, w2, b2, top_k):
    """Pure-JAX reference mirroring the PyTorch sequence-level MoE forward."""
    B, S, H = x.shape
    E = w1.shape[0]
    hi = jax.lax.Precision.HIGHEST
    seq_repr = jnp.mean(x, axis=1)
    logits = jnp.dot(seq_repr, gate_w.T)
    probs = jax.nn.softmax(logits.astype(jnp.float32), axis=-1)
    top_w, top_i = jax.lax.top_k(probs, top_k)
    top_w = top_w / jnp.sum(top_w, axis=-1, keepdims=True)
    top_w = top_w.astype(x.dtype)
    out = jnp.zeros_like(x)
    for e in range(E):
        h = jnp.einsum("bsh,hf->bsf", x, w1[e], precision=hi) + b1[e]
        h = 0.5 * h * (1.0 + jax.lax.erf(h * jnp.float32(0.7071067811865476)))
        y = jnp.einsum("bsf,fh->bsh", h, w2[e], precision=hi) + b2[e]
        w_be = jnp.sum(jnp.where(top_i == e, top_w, 0.0), axis=-1)          # (B,)
        sel = jnp.any(top_i == e, axis=-1)                                  # (B,)
        out = out + jnp.where(sel[:, None, None], w_be[:, None, None] * y, 0.0)
    return out


if __name__ == "__main__":
    # config: hidden_size=32, intermediate_size=64, num_local_experts=4,
    #         num_experts_per_seq=2, router_jitter_noise=0.0 (eval mode)
    B, S, H, F, E, TOP_K = 2, 8, 32, 64, 4, 2

    key = jax.random.PRNGKey(0)
    ks = jax.random.split(key, 6)
    x      = jax.random.normal(ks[0], (B, S, H), dtype=jnp.float32)
    gate_w = jax.random.normal(ks[1], (E, H), dtype=jnp.float32) * 0.1
    w1     = jax.random.normal(ks[2], (E, H, F), dtype=jnp.float32) * 0.1
    b1     = jax.random.normal(ks[3], (E, F), dtype=jnp.float32) * 0.1
    w2     = jax.random.normal(ks[4], (E, F, H), dtype=jnp.float32) * 0.1
    b2     = jax.random.normal(ks[5], (E, H), dtype=jnp.float32) * 0.1

    out = sequence_sparse_moe_block(x, gate_w, w1, b1, w2, b2, TOP_K)
    out = jax.block_until_ready(out)

    ref = reference(x, gate_w, w1, b1, w2, b2, TOP_K)
    # kernel matmuls run at native MXU precision, so compare against the
    # HIGHEST-precision f32 reference with a loose tolerance.
    np.testing.assert_allclose(np.asarray(out), np.asarray(ref),
                               rtol=2e-2, atol=2e-2)

    print("KERNEL_OK")
</pallas_src>

<mosaic_0001>
module attributes {stable_mosaic.version = 11 : i64} {
  func.func @_moe_expert_kernel(%arg0: i32, %arg1: i32, %arg2: i32, %arg3: i32, %arg4: memref<2x2xi32, #tpu.memory_space<smem>>, %arg5: memref<1x8x128xf32, #tpu.memory_space<vmem>>, %arg6: memref<1x128x128xf32, #tpu.memory_space<vmem>>, %arg7: memref<1x1x128xf32, #tpu.memory_space<vmem>>, %arg8: memref<1x128x128xf32, #tpu.memory_space<vmem>>, %arg9: memref<1x1x128xf32, #tpu.memory_space<vmem>>, %arg10: memref<2x2xf32, #tpu.memory_space<smem>>, %arg11: memref<1x8x128xf32, #tpu.memory_space<vmem>>, %arg12: memref<8x128xf32, #tpu.memory_space<vmem>>) attributes {dimension_semantics = [#tpu.dimension_semantics<parallel>, #tpu.dimension_semantics<parallel>, #tpu.dimension_semantics<arbitrary>, #tpu.dimension_semantics<arbitrary>], iteration_bounds = array<i64: 2, 1, 2, 1>, scalar_prefetch = 1 : i64, scratch_operands = 1 : i64, tpu.core_type = #tpu.core_type<tc>, window_params = [{transform_indices = @transform_0, window_bounds = array<i64: 1, 8, 128>}, {transform_indices = @transform_1, window_bounds = array<i64: 1, 128, 128>}, {transform_indices = @transform_2, window_bounds = array<i64: 1, 1, 128>}, {transform_indices = @transform_3, window_bounds = array<i64: 1, 128, 128>}, {transform_indices = @transform_4, window_bounds = array<i64: 1, 1, 128>}, {transform_indices = @transform_5, window_bounds = array<i64: 2, 2>}, {transform_indices = @transform_6, window_bounds = array<i64: 1, 8, 128>}]} {
    %c0_i32 = arith.constant 0 : i32
    %0 = arith.cmpi eq, %arg2, %c0_i32 : i32
    %c0_i32_0 = arith.constant 0 : i32
    %1 = arith.cmpi eq, %arg3, %c0_i32_0 : i32
    %2 = arith.andi %0, %1 : i1
    %3 = arith.extui %2 : i1 to i32
    %c0_i32_1 = arith.constant 0 : i32
    %4 = arith.cmpi ne, %3, %c0_i32_1 : i32
    scf.if %4 {
      %cst_25 = arith.constant 0.000000e+00 : f32
      %41 = vector.broadcast %cst_25 : f32 to vector<8x128xf32>
      %c0_26 = arith.constant 0 : index
      %c0_27 = arith.constant 0 : index
      %42 = vector.load %arg12[%c0_26, %c0_27] : memref<8x128xf32, #tpu.memory_space<vmem>>, vector<8x128xf32>
      tpu.vector_store %arg12[%c0_26, %c0_27], %41 {strides = array<i32>} : memref<8x128xf32, #tpu.memory_space<vmem>>, vector<8x128xf32>,
    } else {
    }
    %5 = arith.index_cast %arg0 : i32 to index
    %6 = arith.index_cast %arg2 : i32 to index
    %7 = memref.load %arg10[%5, %6] : memref<2x2xf32, #tpu.memory_space<smem>>
    %c0 = arith.constant 0 : index
    %c0_2 = arith.constant 0 : index
    %c0_3 = arith.constant 0 : index
    %8 = vector.load %arg5[%c0, %c0_2, %c0_3] : memref<1x8x128xf32, #tpu.memory_space<vmem>>, vector<1x8x128xf32>
    %9 = vector.shape_cast %8 : vector<1x8x128xf32> to vector<8x128xf32>
    %c0_4 = arith.constant 0 : index
    %c0_5 = arith.constant 0 : index
    %c0_6 = arith.constant 0 : index
    %10 = vector.load %arg6[%c0_4, %c0_5, %c0_6] : memref<1x128x128xf32, #tpu.memory_space<vmem>>, vector<1x128x128xf32>
    %11 = vector.shape_cast %10 : vector<1x128x128xf32> to vector<128x128xf32>
    %cst = arith.constant dense<0.000000e+00> : vector<8x128xf32>
    %12 = tpu.matmul %9, %11, %cst {dimension_numbers = #tpu.dot_dimension_numbers<[1], [0], [0], [1], [0, 0, 1, 1], [], []>} : vector<8x128xf32>, vector<128x128xf32>, vector<8x128xf32> -> vector<8x128xf32>
    %c0_7 = arith.constant 0 : index
    %c0_8 = arith.constant 0 : index
    %c0_9 = arith.constant 0 : index
    %13 = vector.load %arg7[%c0_7, %c0_8, %c0_9] : memref<1x1x128xf32, #tpu.memory_space<vmem>>, vector<1x1x128xf32>
    %14 = vector.shape_cast %13 : vector<1x1x128xf32> to vector<1x128xf32>
    %15 = vector.broadcast %14 : vector<1x128xf32> to vector<8x128xf32>
    %16 = arith.addf %12, %15 : vector<8x128xf32>
    %cst_10 = arith.constant 5.000000e-01 : f32
    %17 = vector.broadcast %cst_10 : f32 to vector<8x128xf32>
    %18 = arith.mulf %17, %16 : vector<8x128xf32>
    %cst_11 = arith.constant 0.707106769 : f32
    %19 = vector.broadcast %cst_11 : f32 to vector<8x128xf32>
    %20 = arith.mulf %16, %19 : vector<8x128xf32>
    %21 = math.erf %20 : vector<8x128xf32>
    %cst_12 = arith.constant 1.000000e+00 : f32
    %22 = vector.broadcast %cst_12 : f32 to vector<8x128xf32>
    %23 = arith.addf %22, %21 : vector<8x128xf32>
    %24 = arith.mulf %18, %23 : vector<8x128xf32>
    %c0_13 = arith.constant 0 : index
    %c0_14 = arith.constant 0 : index
    %c0_15 = arith.constant 0 : index
    %25 = vector.load %arg8[%c0_13, %c0_14, %c0_15] : memref<1x128x128xf32, #tpu.memory_space<vmem>>, vector<1x128x128xf32>
    %26 = vector.shape_cast %25 : vector<1x128x128xf32> to vector<128x128xf32>
    %cst_16 = arith.constant dense<0.000000e+00> : vector<8x128xf32>
    %27 = tpu.matmul %24, %26, %cst_16 {dimension_numbers = #tpu.dot_dimension_numbers<[1], [0], [0], [1], [0, 0, 1, 1], [], []>} : vector<8x128xf32>, vector<128x128xf32>, vector<8x128xf32> -> vector<8x128xf32>
    %c0_17 = arith.constant 0 : index
    %c0_18 = arith.constant 0 : index
    %28 = vector.load %arg12[%c0_17, %c0_18] : memref<8x128xf32, #tpu.memory_space<vmem>>, vector<8x128xf32>
    %29 = vector.broadcast %7 : f32 to vector<8x128xf32>
    %30 = arith.mulf %29, %27 : vector<8x128xf32>
    %31 = arith.addf %28, %30 : vector<8x128xf32>
    %c0_19 = arith.constant 0 : index
    %c0_20 = arith.constant 0 : index
    %32 = vector.load %arg12[%c0_19, %c0_20] : memref<8x128xf32, #tpu.memory_space<vmem>>, vector<8x128xf32>
    tpu.vector_store %arg12[%c0_19, %c0_20], %31 {strides = array<i32>} : memref<8x128xf32, #tpu.memory_space<vmem>>, vector<8x128xf32>,
    %c0_i32_21 = arith.constant 0 : i32
    %33 = arith.cmpi eq, %arg3, %c0_i32_21 : i32
    %34 = arith.extui %33 : i1 to i32
    %c0_i32_22 = arith.constant 0 : i32
    %35 = arith.cmpi ne, %34, %c0_i32_22 : i32
    scf.if %35 {
      %c0_25 = arith.constant 0 : index
      %c0_26 = arith.constant 0 : index
      %41 = vector.load %arg12[%c0_25, %c0_26] : memref<8x128xf32, #tpu.memory_space<vmem>>, vector<8x128xf32>
      %c0_27 = arith.constant 0 : index
      %c0_28 = arith.constant 0 : index
      %c0_29 = arith.constant 0 : index
      %42 = vector.load %arg9[%c0_27, %c0_28, %c0_29] : memref<1x1x128xf32, #tpu.memory_space<vmem>>, vector<1x1x128xf32>
      %43 = vector.shape_cast %42 : vector<1x1x128xf32> to vector<1x128xf32>
      %44 = vector.broadcast %7 : f32 to vector<1x128xf32>
      %45 = arith.mulf %44, %43 : vector<1x128xf32>
      %46 = vector.broadcast %45 : vector<1x128xf32> to vector<8x128xf32>
      %47 = arith.addf %41, %46 : vector<8x128xf32>
      %c0_30 = arith.constant 0 : index
      %c0_31 = arith.constant 0 : index
      %48 = vector.load %arg12[%c0_30, %c0_31] : memref<8x128xf32, #tpu.memory_space<vmem>>, vector<8x128xf32>
      tpu.vector_store %arg12[%c0_30, %c0_31], %47 {strides = array<i32>} : memref<8x128xf32, #tpu.memory_space<vmem>>, vector<8x128xf32>,
    } else {
    }
    %c1_i32 = arith.constant 1 : i32
    %36 = arith.cmpi eq, %arg2, %c1_i32 : i32
    %c0_i32_23 = arith.constant 0 : i32
    %37 = arith.cmpi eq, %arg3, %c0_i32_23 : i32
    %38 = arith.andi %36, %37 : i1
    %39 = arith.extui %38 : i1 to i32
    %c0_i32_24 = arith.constant 0 : i32
    %40 = arith.cmpi ne, %39, %c0_i32_24 : i32
    scf.if %40 {
      %c0_25 = arith.constant 0 : index
      %c0_26 = arith.constant 0 : index
      %41 = vector.load %arg12[%c0_25, %c0_26] : memref<8x128xf32, #tpu.memory_space<vmem>>, vector<8x128xf32>
      %c0_27 = arith.constant 0 : index
      %c0_28 = arith.constant 0 : index
      %c0_29 = arith.constant 0 : index
      %42 = vector.load %arg11[%c0_27, %c0_28, %c0_29] : memref<1x8x128xf32, #tpu.memory_space<vmem>>, vector<1x8x128xf32>
      %43 = vector.shape_cast %42 : vector<1x8x128xf32> to vector<8x128xf32>
      %44 = vector.shape_cast %41 : vector<8x128xf32> to vector<1x8x128xf32>
      tpu.vector_store %arg11[%c0_27, %c0_28, %c0_29], %44 {strides = array<i32>} : memref<1x8x128xf32, #tpu.memory_space<vmem>>, vector<1x8x128xf32>,
    } else {
    }
    return
  }
  func.func @transform_0(%arg0: i32, %arg1: i32, %arg2: i32, %arg3: i32, %arg4: memref<2x2xi32, #tpu.memory_space<smem>>) -> (i32, i32, i32) {
    %c0_i32 = arith.constant 0 : i32
    %c0_i32_0 = arith.constant 0 : i32
    return %arg0, %arg1, %c0_i32 : i32, i32, i32
  }
  func.func @transform_1(%arg0: i32, %arg1: i32, %arg2: i32, %arg3: i32, %arg4: memref<2x2xi32, #tpu.memory_space<smem>>) -> (i32, i32, i32) {
    %0 = arith.index_cast %arg0 : i32 to index
    %1 = arith.index_cast %arg2 : i32 to index
    %2 = memref.load %arg4[%0, %1] : memref<2x2xi32, #tpu.memory_space<smem>>
    %c0_i32 = arith.constant 0 : i32
    %c0_i32_0 = arith.constant 0 : i32
    return %2, %c0_i32, %arg3 : i32, i32, i32
  }
  func.func @transform_2(%arg0: i32, %arg1: i32, %arg2: i32, %arg3: i32, %arg4: memref<2x2xi32, #tpu.memory_space<smem>>) -> (i32, i32, i32) {
    %0 = arith.index_cast %arg0 : i32 to index
    %1 = arith.index_cast %arg2 : i32 to index
    %2 = memref.load %arg4[%0, %1] : memref<2x2xi32, #tpu.memory_space<smem>>
    %c0_i32 = arith.constant 0 : i32
    %c0_i32_0 = arith.constant 0 : i32
    return %2, %c0_i32, %arg3 : i32, i32, i32
  }
  func.func @transform_3(%arg0: i32, %arg1: i32, %arg2: i32, %arg3: i32, %arg4: memref<2x2xi32, #tpu.memory_space<smem>>) -> (i32, i32, i32) {
    %0 = arith.index_cast %arg0 : i32 to index
    %1 = arith.index_cast %arg2 : i32 to index
    %2 = memref.load %arg4[%0, %1] : memref<2x2xi32, #tpu.memory_space<smem>>
    %c0_i32 = arith.constant 0 : i32
    %c0_i32_0 = arith.constant 0 : i32
    return %2, %arg3, %c0_i32 : i32, i32, i32
  }
  func.func @transform_4(%arg0: i32, %arg1: i32, %arg2: i32, %arg3: i32, %arg4: memref<2x2xi32, #tpu.memory_space<smem>>) -> (i32, i32, i32) {
    %0 = arith.index_cast %arg0 : i32 to index
    %1 = arith.index_cast %arg2 : i32 to index
    %2 = memref.load %arg4[%0, %1] : memref<2x2xi32, #tpu.memory_space<smem>>
    %c0_i32 = arith.constant 0 : i32
    %c0_i32_0 = arith.constant 0 : i32
    %c0_i32_1 = arith.constant 0 : i32
    return %2, %c0_i32, %c0_i32_0 : i32, i32, i32
  }
  func.func @transform_5(%arg0: i32, %arg1: i32, %arg2: i32, %arg3: i32, %arg4: memref<2x2xi32, #tpu.memory_space<smem>>) -> (i32, i32) {
    %c0_i32 = arith.constant 0 : i32
    %c0_i32_0 = arith.constant 0 : i32
    %c0_i32_1 = arith.constant 0 : i32
    return %c0_i32, %c0_i32_0 : i32, i32
  }
  func.func @transform_6(%arg0: i32, %arg1: i32, %arg2: i32, %arg3: i32, %arg4: memref<2x2xi32, #tpu.memory_space<smem>>) -> (i32, i32, i32) {
    %c0_i32 = arith.constant 0 : i32
    %c0_i32_0 = arith.constant 0 : i32
    return %arg0, %arg1, %c0_i32 : i32, i32, i32
  }
}

</mosaic_0001>

<bundles_post_ra>
// kernel: tpu_custom_call.1
= control target key start
LH: loop header
LB: loop body
LE: loop exit
PB: predicated region body
PF: predicated region fallthrough
CT: control target
= control target key end

     0   :  { %s1545_s27 = smov [#allocation4]   ;;  %s2107_s0 = inlined_call_operand.hbm [shape: s32[2,2], index: 0, kind: input, shape index: {}]   ;;  %s2108_s1 = inlined_call_operand.hbm [shape: f32[2,8,128], index: 1, kind: input, shape index: {}]   ;;  %s2109_s2 = inlined_call_operand.hbm [shape: f32[4,128,128], index: 2, kind: input, shape index: {}]   ;;  %s2110_s3 = inlined_call_operand.hbm [shape: f32[4,1,128], index: 3, kind: input, shape index: {}]   ;;  %s2111_s4 = inlined_call_operand.hbm [shape: f32[4,128,128], index: 4, kind: input, shape index: {}]   ;;  %s2112_s5 = inlined_call_operand.vmem [shape: f32[4,1,128], index: 5, kind: input, shape index: {}]   ;;  %s2113_s6 = inlined_call_operand.hbm [shape: f32[2,2], index: 6, kind: input, shape index: {}]   ;;  %s2114_s7 = inlined_call_operand.hbm [shape: f32[2,8,128], index: 7, kind: output, shape index: {}]  }
   0x1   :  { %2142 = sst [smem:[#allocation46_spill]] %s2108_s1  ;;  %s13_s26 = sshll.u32 %s2107_s0, 4  ;;  %s14_s26 = int_to_ptr.hbm [resolvable:$true] %s13_s26 }
   0x2   :  { %2143 = sst [smem:[#allocation47_spill]] %s2109_s2 }
   0x3   :  { %2144 = sst [smem:[#allocation48_spill]] %s2110_s3 }
   0x4   :  { %2145 = sst [smem:[#allocation49_spill]] %s2111_s4 }
   0x5   :  { %2146 = sst [smem:[#allocation50_spill]] %s2112_s5 }
   0x6   :  { %2147 = sst [smem:[#allocation51_spill]] %s2113_s6 }
   0x7   :  { %2148 = sst [smem:[#allocation52_spill]] %s2114_s7 }
   0x8   :  { %16 = dma.hbm_to_smem %s14_s26, 32, %s1545_s27, [#allocation3] }
   0x9   :  { %1451 = dma.done.wait [#allocation3], 32 }
   0xa   :  { %1452 = vsyncadd [#allocation3], 4294967264 }
   0xb   :  { %19 = sfence }
   0xc   :  { %20 = vsyncpa [#allocation6], 0 }
   0xd   :  { %22 = vsyncpa [#allocation6 + $0x1], 0 }
   0xe   :  { %23 = vsyncpa [#allocation10], 0 }
   0xf   :  { %25 = vsyncpa [#allocation10 + $0x1], 0 }
  0x10   :  { %26 = vsyncpa [#allocation13], 0 }
  0x11   :  { %28 = vsyncpa [#allocation13 + $0x1], 0 }
  0x12   :  { %29 = vsyncpa [#allocation8], 0 }
  0x13   :  { %30 = vsyncpa [#allocation7], 0 }
  0x14   :  { %32 = vsyncpa [#allocation7 + $0x1], 0  ;;  %s1593_s28 = smov 0   ;;  %s1595_s29 = smov 0  }
  0x15   :  { %s1597_s0 = smov 0   ;;  %s1599_s30 = smov 0  }
  0x16   :  { %s1601_s8 = smov 0   ;;  %s1603_s9 = smov 0  }
  0x17   :  { %s1605_s10 = smov 0   ;;  %s1607_s11 = smov 0  }
  0x18   :  { %s1609_s12 = smov 0   ;;  %s1611_s13 = smov 0  }
  0x19   :  { %s1613_s14 = smov 0   ;;  %s1615_s15 = smov 0  }
  0x1a   :  { %s1617_s16 = smov 0   ;;  %s1619_s17 = smov 0  }
  0x1b   :  { %s1621_s18 = smov 0   ;;  %s1623_s19 = smov 0  }
  0x1c   :  { %s1625_s20 = smov 0  }
  0x1d LB: > { %2149 = sst [smem:[#allocation29_spill]] %s1479_s28  ;;  %s56_s21 = sadd.s32 1, %s1535_s18  ;;  %s1543_s20 = sphi %s1625_s20, %s38_s20   ;;  %s1539_s19 = sphi %s1623_s19, %s2229_s19   ;;  %s1535_s18 = sphi %s1621_s18, %s2239_s18   ;;  %s1531_s17 = sphi %s1619_s17, %s2227_s17   ;;  %s1527_s16 = sphi %s1617_s16, %s2226_s16   ;;  %s1523_s15 = sphi %s1615_s15, %s2225_s15   ;;  %s1519_s14 = sphi %s1613_s14, %s2238_s14   ;;  %s1515_s13 = sphi %s1611_s13, %s2237_s13   ;;  %s1511_s12 = sphi %s1609_s12, %s2223_s12   ;;  %s1507_s11 = sphi %s1607_s11, %s2236_s11   ;;  %s1503_s10 = sphi %s1605_s10, %s2235_s10   ;;  %s1499_s9 = sphi %s1603_s9, %s2234_s9   ;;  %s1495_s8 = sphi %s1601_s8, %s2233_s8   ;;  %s1491_s30 = sphi %s1599_s30, %s2232_s30   ;;  %s1487_s0 = sphi %s1597_s0, %s2231_s0   ;;  %s1483_s29 = sphi %s1595_s29, %s2221_s29   ;;  %s1479_s28 = sphi %s1593_s28, %s2220_s28  }
  0x1e   : > { %2150 = sst [smem:[#allocation30_spill]] %s1483_s29  ;;  %s64_s22 = sadd.s32 1, %s1539_s19 }
  0x1f   : > { %2151 = sst [smem:[#allocation31_spill]] %s1487_s0  ;;  %p58_p0 = scmp.ge.s32.totalorder %s56_s21, 2 }
  0x20   : > { %2152 = sst [smem:[#allocation32_spill]] %s1511_s12  ;;  %p2132_p1 = scmp.eq.s32.totalorder %s1543_s20, 0 }
  0x21   : > { %2153 = sst [smem:[#allocation33_spill]] %s1515_s13  ;;  %s96_s23 = sshra.s32 %s1535_s18, 7 }
  0x22   : > { %2154 = sst [smem:[#allocation34_spill]] %s1523_s15  ;;  %s101_s24 = sand.u32 127, %s1535_s18 }
  0x23   : > { %2155 = sst [smem:[#allocation35_spill]] %s1527_s16  ;;  %s2241_s21 = smov (%p58_p0, %s56_s21), 0 }
  0x24   : > { %2156 = sst [smem:[#allocation36_spill]] %s1531_s17  ;;  %s2243_s22 = smov (!%p58_p0, %s64_s22), %s1539_s19 }
  0x25   : > { %2157 = sst [smem:[#allocation37_spill]] %s1535_s18  ;;  %s98_s25 = sadd.s32 %s1539_s19, %s96_s23 }
  0x26   : > { %2158 = sst [smem:[#allocation38_spill]] %s1539_s19  ;;  %s104_s26 = sshra.s32 %s2241_s21, 7 }
  0x27   : > { %2159 = sst [smem:[#allocation39_spill]] %s2241_s21  ;;  %p66_p2 = scmp.ge.s32.totalorder %s2243_s22, 2 }
  0x28   : > { %s972_s27 = sshll.u32 %s98_s25, 7  ;;  %s109_s5 = sand.u32 127, %s2241_s21 }
  0x29   : > { %s1688_s7 = sadd.s32 %s972_s27, %s101_s24  ;;  %s2245_s22 = smov (%p66_p2, %s2243_s22), 0 }
  0x2a   : > { %2160 = sst [smem:[#allocation40_spill]] %s2245_s22  ;;  %s117_s17 = sadd.s32 1, %s1511_s12 }
  0x2b   : > { %s103_s18 = sld [smem:[#allocation4 + %s1688_s7]]  ;;  %s106_s16 = sadd.s32 %s104_s26, %s2245_s22 }
  0x2c   : > { %p124_p3 = scmp.ne.s32.totalorder %s1511_s12, %s1507_s11  ;;  %s973_s4 = sshll.u32 %s106_s16, 7 }
  0x2d   : > { %p130_p4 = scmp.ne.s32.totalorder %s1507_s11, %s1503_s10  ;;  %s1700_s23 = sadd.s32 %s973_s4, %s109_s5 }
  0x2e   : > { %p1704_p5 = por %p124_p3, %p2132_p1  ;;  %s111_s25 = sld [smem:[#allocation4 + %s1700_s23]] }
  0x2f   : > { %p2124_p6 = scmp.lt.s32.totalorder %s1543_s20, 4  ;;  %s363_s16 = sand.u32 1, %s1543_s20  }
  0x30   : > { %s365_s26 = sand.u32 1, %s1511_s12   ;;  %s1736_s1 = sadd.s32 4294967295, %s1543_s20  }
  0x31   : > { %s985_s27 = sshll.u32 %s365_s26, 7  ;;  %p1716_p7 = pnand %p2124_p6, %p1704_p5 }
  0x32   : > { %s1016_s5 = scalar_select %p1704_p5, [#allocation4], [#allocation16] }
  0x33   : > { %s367_s3 = scalar_lea.vmem [#allocation9], %s985_s27  ;;  %p2133_p9 = scmp.eq.s32.totalorder %s1736_s1, 0 }
  0x34   : > { %s112_s21 = ssub.s32 %s103_s18, %s111_s25  ;;  %s1722_s28 = sshll.u32 %s367_s3, 4 }
  0x35   : > { %2163 = sst [smem:[#allocation41_spill]] %s1722_s28  ;;  %p115_p8 = scmp.eq.s32.totalorder %s112_s21, 0 }
  0x36   : > { %s1017_s26 = scalar_select %p1704_p5, %s1688_s7, 0 }
  0x37   : > { %s1729_s0 = scalar_select %p115_p8, %s1511_s12, %s117_s17  }
  0x38   : > { %s2247_s5 = smov (!%p2124_p6, %s1016_s5), [#allocation19]  ;;  %s2249_s26 = smov (!%p2124_p6, %s1017_s26), 0 }
  0x39   : > { %2164 = sst [smem:[#allocation42_spill]] %s1729_s0  ;;  %p980_p10 = scmp.ge.s32.totalorder %s1543_s20, 1 }
  0x3a   : > { %s375_s29 = sld [smem:[%s2247_s5 + %s2249_s26]]  ;;  %p320_p11 = scmp.lt.s32.totalorder %s1543_s20, 5 }
  0x3b   : > { %p1746_p12 = por %p130_p4, %p2133_p9  ;;  %s2166_s6 = sld [smem:[#allocation51_spill]] }
  0x3c   : > { %p1753_p13 = pnand %p980_p10, %p320_p11  ;;  %s2168_s2 = sld [smem:[#allocation47_spill]] }
  0x3d   : > { %s1762_s28 = scalar_lea.sflag [#allocation10], %s363_s16  ;;  %p1224_p3 = pneg %p1716_p7 }
  0x3e   : > { %p1033_p0 = pneg %p1753_p13 }
  0x40   : > { %s1009_s24 = sshll.u32 %s375_s29, 7 }
  0x41   : > { %s332_s21 = sshll.u32 %s2166_s6, 4  ;;  %s333_s21 = int_to_ptr.hbm [resolvable:$true] %s332_s21 }
  0x42   : > { %s381_s26 = scalar_lea.hbm %s2168_s2, %s1009_s24  ;;  %s1227_s27 = scalar_lea.hbm %s2168_s2, 512 }
  0x43   : > { %s382_s10 = sshll.u32 %s381_s26, 4  ;;  %s383_s10 = int_to_ptr.hbm [resolvable:$true] %s382_s10 }
  0x44   : > { %s1220_s0 = sshra.s32 %s383_s10, 4  ;;  %s1221_s0 = int_to_ptr.hbm [resolvable:$true] %s1220_s0 }
  0x45   : > { %s1222_s17 = scalar_lea.hbm %s1221_s0, 128  ;;  %p1228_p8 = scmp.lt.s32.totalorder %s1221_s0, %s2168_s2 }
  0x46   : > { %p1223_p2 = scmp.ne.s32.totalorder %s1221_s0, %s1222_s17  ;;  %p1229_p10 = scmp.lt.s32.totalorder %s1227_s27, %s1222_s17 }
  0x48   : > { %p1225_p4 = pnand %p1224_p3, %p1223_p2  ;;  %p1230_p11 = por %p1229_p10, %p1228_p8 }
  0x4a   : > { %p1226_p5 = pneg %p1225_p4 }
  0x4c   : > { %p1231_p6 = pnand %p1230_p11, %p1226_p5 }
  0x4e   : > { %1234 = shalt.err (!%p1231_p6)
}
  0x4f   : > { %s2125_s16 = smov 128   ;;  %s2169_s26 = sld [smem:[#allocation41_spill]] }
  0x50   : > { %s2126_s0 = smov 8   ;;  %p1034_p6 = pnand %p1033_p0, %p2133_p9 }
  0x51   : > { %s1548_s29 = smov [#allocation14]   ;;  %s971_s18 = sadd.s32 4294967294, %s1543_s20  }
  0x52   : > { %1036 = dma.hbm_to_smem (!%p1034_p6), %s333_s21, 32, %s1548_s29, [#allocation8]  }
  0x53   : > { %s68_s27 = ssub.s32 %s1539_s19, %s2245_s22  ;;  %s73_s24 = sadd.s32 1, %s1523_s15 }
  0x54   : > { %p71_p2 = scmp.eq.s32.totalorder %s68_s27, 0  ;;  %p80_p3 = scmp.ne.s32.totalorder %s1523_s15, %s1519_s14 }
  0x55   : > { %s2170_s17 = int_to_ptr.vmem [resolvable:$true] %s2169_s26  ;;  %p86_p4 = scmp.ne.s32.totalorder %s1519_s14, %s1515_s13 }
  0x56   : > { %1045 = dma.hbm_to_vmem [thread:$0]  (!%p1716_p7), %s383_s10, 2048, %s2170_s17, %s1762_s28, %s2125_s16, %s2125_s16, %s2126_s0  }
  0x57   : > { %s1794_s4 = scalar_select %p71_p2, %s1523_s15, %s73_s24  }
  0x58   : > { %p1798_p5 = por %p2132_p1, %p80_p3  ;;  %p1804_p7 = por %p2133_p9, %p86_p4 }
  0x59   : > { %2171 = sst [smem:[#allocation43_spill]] %s1794_s4  ;;  %p307_p0 = scmp.eq.s32.totalorder %s1736_s1, 3 }
  0x5a   : > { %p313_p8 = scmp.eq.s32.totalorder %s971_s18, 3  ;;  %s343_s21 = sand.u32 1, %s1523_s15  }
  0x5b   : > { %s984_s26 = sshll.u32 %s1539_s19, 3  ;;  %p1811_p10 = por %p307_p0, %p80_p3 }
  0x5c   : > { %p1815_p11 = por %p313_p8, %p86_p4  ;;  %s983_s27 = sshll.u32 %s343_s21, 3 }
  0x5d   : > { %s2174_s17 = scalar_select %p1811_p10, 1, 0 }
  0x5e   : > { %s2176_s29 = scalar_select %p1815_p11, 1, 0 }
  0x5f   : > { %2175 = sst [smem:[#allocation41_spill]] %s2174_s17  ;;  %s347_s6 = scalar_lea.vmem [#allocation5], %s983_s27 }
  0x60   : > { %2177 = sst [smem:[#allocation44_spill]] %s2176_s29  ;;  %s356_s22 = sshll.u32 %s347_s6, 4  ;;  %s357_s22 = int_to_ptr.vmem [resolvable:$true] %s356_s22 }
  0x61   : > { %s2178_s16 = sld [smem:[#allocation46_spill]]  ;;  %p2179_p6 = scmp.lt.s32.totalorder %s1543_s20, 4 }
  0x62   : > { %s344_s19 = scalar_lea.sflag [#allocation6], %s343_s21  ;;  %s147_s4 = sld [smem:[#allocation4 + %s1688_s7]] }
  0x63   : > { %p1038_p2 = pnand %p2179_p6, %p1798_p5  ;;  %s155_s15 = sld [smem:[#allocation4 + %s1700_s23]] }
  0x64   : > { %p168_p3 = scmp.ne.s32.totalorder %s1499_s9, %s1495_s8  ;;  %p174_p4 = scmp.ne.s32.totalorder %s1495_s8, %s1491_s30 }
  0x65   : > { %s2180_s6 = sld [smem:[#allocation30_spill]] }
  0x66   : > { %p170_p0 = por %p168_p3, %p2132_p1  ;;  %p1838_p5 = por %p174_p4, %p2133_p9 }
  0x67   : > { %s352_s0 = scalar_lea.hbm %s2178_s16, %s984_s26  ;;  %s396_s16 = sand.u32 1, %s1499_s9  }
  0x68   : > { %s354_s2 = sshll.u32 %s352_s0, 4  ;;  %s161_s0 = sadd.s32 1, %s1499_s9  ;;  %s355_s2 = int_to_ptr.hbm [resolvable:$true] %s354_s2 }
  0x69   : > { %1040 = dma.hbm_to_vmem [thread:$0]  (!%p1038_p2), %s355_s2, 128, %s357_s22, %s344_s19  }
  0x6a   : > { %s2181_s26 = sld [smem:[#allocation31_spill]]  ;;  %s156_s21 = ssub.s32 %s147_s4, %s155_s15 }
  0x6b   : > { %s2182_s5 = scalar_select %p1838_p5, 1, 0 }
  0x6c   : > { %s2184_s2 = sld [smem:[#allocation29_spill]]  ;;  %s397_s30 = scalar_lea.vmem [#allocation11], %s396_s16 }
  0x6d   : > { %2183 = sst [smem:[#allocation45_spill]] %s2182_s5  ;;  %s413_s27 = sshll.u32 %s397_s30, 4  ;;  %s414_s27 = int_to_ptr.vmem [resolvable:$true] %s413_s27 }
  0x6e   : > { %s1019_s19 = scalar_select %p170_p0, [#allocation4], [#allocation17] }
  0x6f   : > { %s1020_s22 = scalar_select %p170_p0, %s1688_s7, 0 }
  0x70   : > { %p159_p8 = scmp.eq.s32.totalorder %s156_s21, 0  ;;  %p1845_p2 = pnand %p2179_p6, %p170_p0 }
  0x71   : > { %p2186_p3 = pmov %p2179_p6  ;;  %s191_s29 = sld [smem:[#allocation4 + %s1688_s7]] }
  0x72   : > { %s1852_s18 = scalar_select %p159_p8, %s1499_s9, %s161_s0  }
  0x73   : > { %s2251_s19 = smov (!%p2186_p3, %s1019_s19), [#allocation20]  ;;  %p2187_p4 = pmov %p2186_p3 }
  0x74   : > { %s199_s15 = sld [smem:[#allocation4 + %s1700_s23]]  ;;  %p212_p1 = scmp.ne.s32.totalorder %s2181_s26, %s2180_s6 }
  0x75   : > { %s2253_s22 = smov (!%p2187_p4, %s1020_s22), 0  ;;  %p218_p9 = scmp.ne.s32.totalorder %s2180_s6, %s2184_s2 }
  0x76   : > { %s405_s12 = sld [smem:[%s2251_s19 + %s2253_s22]]  ;;  %s420_s13 = sand.u32 1, %s2181_s26  }
  0x77   : > { %s2188_s21 = sld [smem:[#allocation48_spill]]  ;;  %p2189_p0 = scmp.eq.s32.totalorder %s1736_s1, 0 }
  0x78   : > { %p2191_p8 = scmp.eq.s32.totalorder %s1543_s20, 0  ;;  %p1299_p11 = pneg %p1845_p2 }
  0x79   : > { %p1868_p6 = por %p218_p9, %p2189_p0 }
  0x7a   : > { %p1874_p3 = por %p212_p1, %p2191_p8 }
  0x7d   : > { %s409_s30 = scalar_lea.hbm %s2188_s21, %s405_s12  ;;  %s1302_s19 = scalar_lea.hbm %s2188_s21, 4 }
  0x7e   : > { %s411_s17 = sshll.u32 %s409_s30, 4  ;;  %s412_s17 = int_to_ptr.hbm [resolvable:$true] %s411_s17 }
  0x7f   : > { %s1295_s23 = sshra.s32 %s412_s17, 4  ;;  %s1296_s23 = int_to_ptr.hbm [resolvable:$true] %s1295_s23 }
  0x80   : > { %s1297_s6 = scalar_lea.hbm %s1296_s23, 1  ;;  %p1303_p9 = scmp.lt.s32.totalorder %s1296_s23, %s2188_s21 }
  0x81   : > { %p1298_p4 = scmp.ne.s32.totalorder %s1296_s23, %s1297_s6  ;;  %p1304_p1 = scmp.lt.s32.totalorder %s1302_s19, %s1297_s6 }
  0x83   : > { %p1300_p10 = pnand %p1299_p11, %p1298_p4  ;;  %p1305_p0 = por %p1304_p1, %p1303_p9 }
  0x85   : > { %p1301_p5 = pneg %p1300_p10 }
  0x87   : > { %p1306_p8 = pnand %p1305_p0, %p1301_p5 }
  0x89   : > { %1309 = shalt.err (!%p1306_p8)
}
  0x8a   : > { %1050 = dma.hbm_to_vmem [thread:$0]  (!%p1845_p2), %s412_s17, 16, %s414_s27, %s1762_s28  }
  0x8b   : > { %s200_s16 = ssub.s32 %s191_s29, %s199_s15  ;;  %s205_s30 = sadd.s32 1, %s2181_s26 }
  0x8c   : > { %p203_p10 = scmp.eq.s32.totalorder %s200_s16, 0  ;;  %s990_s23 = sshll.u32 %s420_s13, 7 }
  0x8d   : > { %s1022_s24 = scalar_select %p1874_p3, [#allocation4], [#allocation18] }
  0x8e   : > { %s1895_s6 = scalar_select %p203_p10, %s2181_s26, %s205_s30  }
  0x8f   : > { %s2255_s7 = smov (!%p1874_p3, %s1688_s7), 0  ;;  %p2193_p11 = scmp.lt.s32.totalorder %s1543_s20, 4 }
  0x90   : > { %s424_s29 = scalar_lea.vmem [#allocation12], %s990_s23  ;;  %s2197_s19 = sld [smem:[#allocation49_spill]] }
  0x91   : > { %s2257_s24 = smov (!%p2193_p11, %s1022_s24), [#allocation21]  ;;  %p2194_p5 = pmov %p2193_p11 }
  0x92   : > { %s442_s27 = sshll.u32 %s424_s29, 4  ;;  %s421_s30 = scalar_lea.sflag [#allocation13], %s420_s13  ;;  %s443_s27 = int_to_ptr.vmem [resolvable:$true] %s442_s27 }
  0x93   : > { %s2259_s7 = smov (!%p2194_p5, %s2255_s7), 0  ;;  %p2195_p4 = pmov %p2194_p5 }
  0x94   : > { %s432_s17 = sld [smem:[%s2257_s24 + %s2259_s7]] }
  0x95   : > { %p1908_p9 = pnand %p2195_p4, %p1874_p3 }
  0x96   : > { %s2198_s22 = smov %s2197_s19 }
  0x97   : > { %p1329_p3 = pneg %p1908_p9  ;;  %s1332_s24 = scalar_lea.hbm %s2198_s22, 512 }
  0x9a   : > { %s1010_s15 = sshll.u32 %s432_s17, 7 }
  0x9b   : > { %s439_s4 = scalar_lea.hbm %s2197_s19, %s1010_s15 }
  0x9c   : > { %s440_s16 = sshll.u32 %s439_s4, 4  ;;  %s441_s16 = int_to_ptr.hbm [resolvable:$true] %s440_s16 }
  0x9d   : > { %s1325_s0 = sshra.s32 %s441_s16, 4  ;;  %s1326_s0 = int_to_ptr.hbm [resolvable:$true] %s1325_s0 }
  0x9e   : > { %s1327_s21 = scalar_lea.hbm %s1326_s0, 128  ;;  %p1333_p8 = scmp.lt.s32.totalorder %s1326_s0, %s2198_s22 }
  0x9f   : > { %p1328_p2 = scmp.ne.s32.totalorder %s1326_s0, %s1327_s21  ;;  %p1334_p10 = scmp.lt.s32.totalorder %s1332_s24, %s1327_s21 }
  0xa1   : > { %p1330_p1 = pnand %p1329_p3, %p1328_p2  ;;  %p1335_p11 = por %p1334_p10, %p1333_p8 }
  0xa3   : > { %p1331_p0 = pneg %p1330_p1 }
  0xa5   : > { %p1336_p5 = pnand %p1335_p11, %p1331_p0 }
  0xa7   : > { %1339 = shalt.err (!%p1336_p5)
}
  0xa8   : > { %s2199_s13 = smov 8   ;;  %s2200_s26 = smov 128  }
  0xa9   : > { %1055 = dma.hbm_to_vmem [thread:$0]  (!%p1908_p9), %s441_s16, 2048, %s443_s27, %s421_s30, %s2200_s26, %s2200_s26, %s2199_s13  }
  0xaa   : > { %476 = sbr.rel (%p1753_p13) target bundleno = 599 (0x257), region = 44  ;;  %s1933_s15 = sand.u32 (!%p1753_p13), 1, %s1519_s14  }
  0xab   : > { %s995_s21 = sshll.u32 (!%p1753_p13), %s1933_s15, 3  ;;  %s479_s12 = scalar_lea.sflag (!%p1753_p13), [#allocation6], %s1933_s15 }
  0xac   : > { %s1939_s2 = scalar_lea.vmem (!%p1753_p13), [#allocation5], %s995_s21 }
  0xaf   : > { %1454 = dma.done.wait (%p1804_p7), %s479_s12, 128  }
  0xb0   : > { %1456 = vsyncadd (%p1804_p7), %s479_s12, 4294967168  ;;  %s488_s25 = sand.u32 1, %s1736_s1   ;;  %s490_s28 = sand.u32 1, %s1507_s11  }
  0xb1   : > { %s996_s27 = sshll.u32 %s490_s28, 7  ;;  %s489_s19 = scalar_lea.sflag [#allocation10], %s488_s25 }
  0xb2   : > { %s1947_s4 = scalar_lea.vmem [#allocation9], %s996_s27 }
  0xb3   : > { %1458 = dma.done.wait (%p1746_p12), %s489_s19, 2048  }
  0xb4   : > { %1460 = vsyncadd (%p1746_p12), %s489_s19, 4294965248  ;;  %s2201_s16 = sld [smem:[#allocation45_spill]]  ;;  %s500_s30 = sand.u32 1, %s1495_s8  }
  0xb5   : > { %s1954_s0 = scalar_lea.vmem [#allocation11], %s500_s30 }
  0xba   : > { %p2202_p13 = scmp.ne.s32.totalorder %s2201_s16, 0 }
  0xbc   : > { %1462 = dma.done.wait (%p2202_p13), %s489_s19, 16  }
  0xbd   : > { %1464 = vsyncadd (%p2202_p13), %s489_s19, 4294967280  ;;  %s2203_s10 = sld [smem:[#allocation30_spill]] }
  0xc3   : > { %s507_s7 = sand.u32 1, %s2203_s10  }
  0xc4   : > { %s997_s23 = sshll.u32 %s507_s7, 7  ;;  %s508_s24 = scalar_lea.sflag [#allocation13], %s507_s7 }
  0xc5   : > { %s1961_s17 = scalar_lea.vmem [#allocation12], %s997_s23 }
  0xc6   : > { %1466 = dma.done.wait (%p1868_p6), %s508_s24, 2048  }
  0xc7   : > { %1468 = vsyncadd (%p1868_p6), %s508_s24, 4294965248  ;;  %p2204_p12 = scmp.eq.s32.totalorder %s1736_s1, 0 }
  0xc9   : > { %1470 = dma.done.wait (%p2204_p12), [#allocation8], 32   ;;  %p2205_p7 = pmov %p2204_p12 }
  0xcb   : > { %1472 = vsyncadd (%p2205_p7), [#allocation8], 4294967264 }
  0xcc   : > { %522 = sfence }
  0xcd   : > { %s2206_s3 = sld [smem:[#allocation35_spill]]  ;;  %s1986_s30 = scalar_lea.vmem [#allocation15], %s995_s21 }
  0xce   : > { %s2207_s29 = sld [smem:[#allocation36_spill]] }
  0xcf   : > { %s2208_s19 = sld [smem:[#allocation50_spill]] }
  0xd3   : > { %s597_s13 = sshra.s32 %s2206_s3, 7  ;;  %s602_s12 = sand.u32 127, %s2206_s3 }
  0xd4   : > { %s599_s26 = sadd.s32 %s2207_s29, %s597_s13  ;;  %p616_p4 = scmp.eq.s32.totalorder %s2206_s3, 0 }
  0xd5   : > { %s1000_s25 = sshll.u32 %s599_s26, 7  ;;  %v1549_v0 = vmov (%p616_p4), 0.0  }
  0xd6   : > { %s1975_s28 = sadd.s32 %s1000_s25, %s602_s12  ;;  %622 = vst [vmem:[#allocation2] sm:$0xff] (%p616_p4), %v1549_v0 }
  0xd7   : > { %s604_s5 = sld [smem:[#allocation4 + %s1975_s28]] }
  0xdc   : > { %621 = sbr.rel (!%p616_p4) target bundleno = 225 (0xe1), region = 68 }
  0xdd   : > { %p605_p6 = scmp.lt.s32.totalorder %s604_s5, 3 }
  0xdf   : > { %s2261_s5 = smov (!%p605_p6, %s604_s5), 3 }
  0xe0   : > { %s607_s16 = scalar_lea.vmem %s2208_s19, %s2261_s5 }
  0xe1 PF: > { %v647_v1 = vld [vmem:[%s1947_s4 + $0x78] sm:$0xff]  ;;  %v646_v2 = vld [vmem:[%s1947_s4 + $0x70] sm:$0xff]  ;;  %v645_v3 = vld [vmem:[%s1947_s4 + $0x68] sm:$0xff]  ;;  %s2209_s21 = sld [smem:[#allocation35_spill]] }
  0xe2   : > { %652 = vmatpush.msra.mxu0 %v647_v1  ;;  %v644_v4 = vld [vmem:[%s1947_s4 + $0x60] sm:$0xff]  ;;  %v643_v5 = vld [vmem:[%s1947_s4 + $0x58] sm:$0xff]  ;;  %v642_v6 = vld [vmem:[%s1947_s4 + $0x50] sm:$0xff] }
  0xe3   : > { %v641_v7 = vld [vmem:[%s1947_s4 + $0x48] sm:$0xff]  ;;  %v640_v8 = vld [vmem:[%s1947_s4 + $0x40] sm:$0xff]  ;;  %v639_v9 = vld [vmem:[%s1947_s4 + $0x38] sm:$0xff] }
  0xe4   : > { %653 = vmatpush.msra.mxu0 %v646_v2  ;;  %v638_v10 = vld [vmem:[%s1947_s4 + $0x30] sm:$0xff]  ;;  %v637_v11 = vld [vmem:[%s1947_s4 + $0x28] sm:$0xff]  ;;  %v636_v12 = vld [vmem:[%s1947_s4 + $0x20] sm:$0xff] }
  0xe5   : > { %v635_v13 = vld [vmem:[%s1947_s4 + $0x18] sm:$0xff]  ;;  %v634_v14 = vld [vmem:[%s1947_s4 + $0x10] sm:$0xff]  ;;  %v633_v15 = vld [vmem:[%s1947_s4 + $0x8] sm:$0xff] }
  0xe6   : > { %654 = vmatpush.msra.mxu0 %v645_v3  ;;  %v632_v16 = vld [vmem:[%s1947_s4] sm:$0xff]  ;;  %v631_v17 = vld [vmem:[%s1939_s2] sm:$0xff]  ;;  %s630_s2 = sld [smem:[#allocation14 + %s1975_s28]] }
  0xe7   : > { %v731_v18 = vld [vmem:[%s1961_s17 + $0x78] sm:$0xff]  ;;  %v730_v19 = vld [vmem:[%s1961_s17 + $0x70] sm:$0xff]  ;;  %v729_v20 = vld [vmem:[%s1961_s17 + $0x68] sm:$0xff]  ;;  %p768_p9 = scmp.eq.s32.totalorder %s2209_s21, 1 }
  0xe8   : > { %655 = vmatpush.msra.mxu0 %v644_v4  ;;  %732 = vmatpush.msra.mxu1 %v731_v18  ;;  %v728_v21 = vld [vmem:[%s1961_s17 + $0x60] sm:$0xff]  ;;  %v1205_v22 = vld [vmem:[%s1954_s0] ss:$0 sm:$0xff]  ;;  %v726_v24 = vld [vmem:[%s1961_s17 + $0x50] sm:$0xff] }
  0xe9   : > { %v727_v23 = vld [vmem:[%s1961_s17 + $0x58] sm:$0xff]  ;;  %v725_v26 = vld [vmem:[%s1961_s17 + $0x48] sm:$0xff]  ;;  %v724_v28 = vld [vmem:[%s1961_s17 + $0x40] sm:$0xff] }
  0xea   : > { %656 = vmatpush.msra.mxu0 %v643_v5  ;;  %733 = vmatpush.msra.mxu1 %v730_v19  ;;  %v723_v30 = vld [vmem:[%s1961_s17 + $0x38] sm:$0xff]  ;;  %v722_v32 = vld [vmem:[%s1961_s17 + $0x30] sm:$0xff]  ;;  %v721_v34 = vld [vmem:[%s1961_s17 + $0x28] sm:$0xff] }
  0xeb   : > { %v720_v37 = vld [vmem:[%s1961_s17 + $0x20] sm:$0xff]  ;;  %v719_v40 = vld [vmem:[%s1961_s17 + $0x18] sm:$0xff]  ;;  %v718_v43 = vld [vmem:[%s1961_s17 + $0x10] sm:$0xff] }
  0xec   : > { %657 = vmatpush.msra.mxu0 %v642_v6  ;;  %734 = vmatpush.msra.mxu1 %v729_v20  ;;  %v717_v46 = vld [vmem:[%s1961_s17 + $0x8] sm:$0xff]  ;;  %v716_v48 = vld [vmem:[%s1961_s17] sm:$0xff] }
  0xee   : > { %658 = vmatpush.msra.mxu0 %v641_v7  ;;  %735 = vmatpush.msra.mxu1 %v728_v21 }
  0xf0   : > { %659 = vmatpush.msra.mxu0 %v640_v8  ;;  %736 = vmatpush.msra.mxu1 %v727_v23 }
  0xf2   : > { %660 = vmatpush.msra.mxu0 %v639_v9  ;;  %737 = vmatpush.msra.mxu1 %v726_v24 }
  0xf4   : > { %661 = vmatpush.msra.mxu0 %v638_v10  ;;  %738 = vmatpush.msra.mxu1 %v725_v26 }
  0xf6   : > { %662 = vmatpush.msra.mxu0 %v637_v11  ;;  %739 = vmatpush.msra.mxu1 %v724_v28 }
  0xf8   : > { %663 = vmatpush.msra.mxu0 %v636_v12  ;;  %740 = vmatpush.msra.mxu1 %v723_v30  ;;  %v753_v12 = vstv %s630_s2 }
  0xfa   : > { %664 = vmatpush.msra.mxu0 %v635_v13  ;;  %741 = vmatpush.msra.mxu1 %v722_v32  ;;  %v761_v13 = vld [vmem:[%s607_s16] sm:$0x1] }
  0xfc   : > { %665 = vmatpush.msra.mxu0 %v634_v14  ;;  %742 = vmatpush.msra.mxu1 %v721_v34  ;;  %v762_v14 = vmul.f32 %v761_v13, %v753_v12 }
  0xfe   : > { %666 = vmatpush.msra.mxu0 %v633_v15  ;;  %743 = vmatpush.msra.mxu1 %v720_v37  ;;  %v764_v18 = vperm.slane %v762_v14, 0 }
 0x100   : > { %667 = vmatpush.msra.mxu0 %v632_v16  ;;  %744 = vmatpush.msra.mxu1 %v719_v40  ;;  %v752_v16 = vld [vmem:[#allocation2] sm:$0xff] }
 0x101   : > { %668 = vmatmul.f32.vlgmr.msra.gmra.mxu0 %v631_v17 }
 0x102   : > { %745 = vmatpush.msra.mxu1 %v718_v43 }
 0x104   : > { %746 = vmatpush.msra.mxu1 %v717_v46 }
 0x106   : > { %747 = vmatpush.msra.mxu1 %v716_v48 }
 0x17e   : > { %v669_v25 = vpop.f32.mrf.mxu0 }
 0x17f   : > { %v670_v27 = vadd.f32 %v1205_v22, %v669_v25 }
 0x181   : > { %v673_v29 = vmul.f32 0.70710677, %v670_v27  ;;  %v672_v9 = vmul.f32 0.5, %v670_v27 }
 0x183   : > { %v674_v31 = vmul.f32 %v673_v29, %v673_v29 }
 0x185   : > { %v675_v33 = vmin.f32 %v674_v31, 16.0 }
 0x187   : > { %v676_v35 = vmul.f32 2.1237322e-06, %v675_v33  ;;  %v687_v36 = vmul.f32 3.8918573e-05, %v675_v33 }
 0x189   : > { %v677_v38 = vadd.f32 0.00028619796, %v676_v35  ;;  %v688_v39 = vadd.f32 0.001143296, %v687_v36 }
 0x18b   : > { %v678_v41 = vmul.f32 %v677_v38, %v675_v33  ;;  %v689_v42 = vmul.f32 %v688_v39, %v675_v33 }
 0x18d   : > { %v690_v44 = vadd.f32 0.014752088, %v689_v42  ;;  %v679_v45 = vadd.f32 0.0036580483, %v678_v41 }
 0x18f   : > { %v691_v47 = vmul.f32 %v690_v44, %v675_v33  ;;  %v680_v50 = vmul.f32 %v679_v45, %v675_v33 }
 0x191   : > { %v692_v49 = vadd.f32 0.112945676, %v691_v47  ;;  %v681_v53 = vadd.f32 0.05243302, %v680_v50 }
 0x193   : > { %v693_v51 = vmul.f32 %v692_v49, %v675_v33  ;;  %v682_v56 = vmul.f32 %v681_v53, %v675_v33 }
 0x195   : > { %v694_v52 = vadd.f32 0.4994258, %v693_v51  ;;  %v683_v57 = vadd.f32 0.18741608, %v682_v56 }
 0x197   : > { %v695_v54 = vmul.f32 %v694_v52, %v675_v33  ;;  %v684_v59 = vmul.f32 %v683_v57, %v675_v33 }
 0x199   : > { %v696_v55 = vadd.f32 1.0, %v695_v54  ;;  %v685_v63 = vadd.f32 1.1283791, %v684_v59 }
 0x19b   : > { %1206 = vrcp.f32 %v696_v55  ;;  %v708_v62 = vand.u32 2147483648, %v696_v55  ;;  %v706_v1 = vand.u32 2147483647, %v696_v55  ;;  %vm702_vm1 = vweird.f32 %v696_v55 }
 0x19c   : > { %v686_v4 = vmul.f32 %v685_v63, %v673_v29 }
 0x19d   : > { %v709_v3 = vor.u32 1.1754944e-38, %v708_v62  ;;  %vm707_vm3 = vcmp.eq.f32.partialorder %v706_v1, 8.507059e+37 }
 0x1a1   : > { %v1207_v58 = vpop.eup %1206 }
 0x1a2   : > { %v698_v60 = vmul.f32 %v1207_v58, %v696_v55  ;;  %vm703_vm0 = vweird.f32 %v1207_v58 }
 0x1a3   : > { %vm704_vm2 = vmor %vm702_vm1, %vm703_vm0 }
 0x1a4   : > { %v699_v61 = vsub.f32 1.0, %v698_v60 }
 0x1a6   : > { %v700_v0 = vmul.f32 %v1207_v58, %v699_v61 }
 0x1a8   : > { %v701_v2 = vadd.f32 %v1207_v58, %v700_v0 }
 0x1aa   : > { %v705_v5 = vsel %vm704_vm2, %v1207_v58, %v701_v2 }
 0x1ab   : > { %v710_v6 = vsel %vm707_vm3, %v709_v3, %v705_v5 }
 0x1ac   : > { %v711_v7 = vmul.f32 %v710_v6, %v686_v4 }
 0x1ae   : > { %v1003_v8 = vclamps-f32 %v711_v7, 1.0 }
 0x1b0   : > { %v714_v10 = vadd.f32 1.0, %v1003_v8 }
 0x1b2   : > { %v715_v11 = vmul.f32 %v714_v10, %v672_v9 }
 0x1b4   : > { %748 = vmatmul.f32.vlgmr.msra.gmra.mxu1 %v715_v11 }
 0x231   : > { %v749_v15 = vpop.f32.mrf.mxu1 }
 0x232   : > { %v754_v17 = vmul.f32 %v753_v12, %v749_v15 }
 0x234   : > { %v755_v19 = vadd.f32 %v754_v17, %v752_v16  ;;  %772 = sbr.rel (!%p768_p9) target bundleno = 577 (0x241), region = 76 }
 0x236   : > { %v766_v20 = vadd.f32 %v764_v18, %v755_v19 }
 0x238   : > { %767 = vst [vmem:[#allocation2] sm:$0xff] %v766_v20 }
 0x23f   : > { %v773_v21 = vld [vmem:[#allocation2] sm:$0xff] }
 0x240   : > { %774 = vst [vmem:[%s1986_s30] sm:$0xff] %v773_v21 }
 0x241 PF: > { %s2211_s7 = sld [smem:[#allocation36_spill]]  ;;  %s789_s12 = sshll.u32 %s1986_s30, 4  ;;  %s790_s12 = int_to_ptr.vmem [resolvable:$true] %s789_s12 }
 0x242   : > { %s2212_s23 = sld [smem:[#allocation41_spill]]  ;;  %s776_s28 = scalar_lea.sflag [#allocation7], %s1933_s15 }
 0x243   : > { %s2213_s29 = sld [smem:[#allocation52_spill]] }
 0x247   : > { %s1006_s24 = sshll.u32 %s2211_s7, 3 }
 0x248   : > { %p2215_p3 = scmp.ne.s32.totalorder %s2212_s23, 0 }
 0x249   : > { %s2214_s26 = smov %s2213_s29  ;;  %s787_s13 = scalar_lea.hbm %s2213_s29, %s1006_s24 }
 0x24a   : > { %s791_s25 = sshll.u32 %s787_s13, 4  ;;  %s1375_s16 = scalar_lea.hbm %s2214_s26, 16  ;;  %s792_s25 = int_to_ptr.hbm [resolvable:$true] %s791_s25 }
 0x24b   : > { %s1369_s5 = sshra.s32 %s792_s25, 4  ;;  %s1370_s5 = int_to_ptr.hbm [resolvable:$true] %s1369_s5 }
 0x24c   : > { %s1371_s1 = scalar_lea.hbm %s1370_s5, 8  ;;  %p1376_p8 = scmp.lt.s32.totalorder %s1370_s5, %s2214_s26 }
 0x24d   : > { %p1372_p2 = scmp.ne.s32.totalorder %s1370_s5, %s1371_s1  ;;  %p1377_p10 = scmp.lt.s32.totalorder %s1375_s16, %s1371_s1 }
 0x24f   : > { %p1373_p1 = pnand %p1372_p2, %p2215_p3  ;;  %p1378_p11 = por %p1377_p10, %p1376_p8 }
 0x251   : > { %p1374_p0 = pneg %p1373_p1 }
 0x253   : > { %p1379_p5 = pnand %p1378_p11, %p1374_p0 }
 0x255   : > { %1382 = shalt.err (!%p1379_p5)
}
 0x256   : > { %1031 = dma.vmem_to_hbm [thread:$0]  (%p2215_p3), %s790_s12, 128, %s792_s25, %s776_s28  }
 0x257 PF: > { %s2216_s15 = sld [smem:[#allocation33_spill]]  ;;  %p1063_p13 = scmp.ge.s32.totalorder %s1543_s20, 2 }
 0x258   : > { %s2217_s30 = sld [smem:[#allocation44_spill]] }
 0x25d   : > { %s803_s4 = sand.u32 1, %s2216_s15  }
 0x25e   : > { %p2218_p12 = scmp.ne.s32.totalorder %s2217_s30, 0  ;;  %s804_s0 = scalar_lea.sflag [#allocation7], %s803_s4 }
 0x260   : > { %p1057_p7 = pnand %p1063_p13, %p2218_p12 }
 0x262   : > { %p1058_p4 = pneg %p1057_p7 }
 0x264   : > { %1474 = dma.done.wait (%p1058_p4), %s804_s0, 128  }
 0x265   : > { %1476 = vsyncadd (%p1058_p4), %s804_s0, 4294967168  ;;  %s38_s20 = sadd.s32 1, %s1543_s20   ;;  %s2220_s28 = sld [smem:[#allocation30_spill]] }
 0x266   : > { %p2051_p6 = scmp.ge.s32.totalorder %s38_s20, 6   ;;  %s2221_s29 = sld [smem:[#allocation31_spill]] }
 0x267   : > { %s2222_s7 = sld [smem:[#allocation32_spill]]  ;;  %s2231_s0 = smov %s1895_s6 }
 0x268   : > { %s2223_s12 = sld [smem:[#allocation42_spill]]  ;;  %s2232_s30 = smov %s1495_s8 }
 0x269   : > { %s2224_s23 = sld [smem:[#allocation34_spill]]  ;;  %s2233_s8 = smov %s1499_s9 }
 0x26a   : > { %s2225_s15 = sld [smem:[#allocation43_spill]]  ;;  %s2234_s9 = smov %s1852_s18 }
 0x26b   : > { %s2226_s16 = sld [smem:[#allocation37_spill]]  ;;  %s2235_s10 = smov %s1507_s11 }
 0x26c   : > { %s2227_s17 = sld [smem:[#allocation38_spill]]  ;;  %s2237_s13 = smov %s1519_s14 }
 0x26d   : > { %s2228_s24 = sld [smem:[#allocation39_spill]]  ;;  %s2236_s11 = smov %s2222_s7 }
 0x26e   : > { %s2229_s19 = sld [smem:[#allocation40_spill]] }
 0x26f   : > { %s2238_s14 = smov %s2224_s23  ;;  %37 = sbr.rel (!%p2051_p6) target bundleno = 29 (0x1d), region = 146 }
 0x273   : > { %s2239_s18 = smov %s2228_s24 }
 0x274   :  { %810 = vsyncpa [#allocation6], 1 }
 0x275   :  { %812 = vsyncpa [#allocation6 + $0x1], 1 }
 0x276   :  { %813 = vsyncpa [#allocation10], 1 }
 0x277   :  { %815 = vsyncpa [#allocation10 + $0x1], 1 }
 0x278   :  { %816 = vsyncpa [#allocation13], 1 }
 0x279   :  { %818 = vsyncpa [#allocation13 + $0x1], 1 }
 0x27a   :  { %819 = vsyncpa [#allocation7], 1 }
 0x27b   :  { %821 = vsyncpa [#allocation7 + $0x1], 1 }
 0x27c   :  { %822 = vsyncpa [#allocation8], 1 }
 0x27d   :  { %824 = vsyncpa [#allocation8 + $0x1], 1 }

</bundles_post_ra>
